<compile_context>
chip_gen: v6e
topology: v6e:2x2x1
jax: 0.10.0
libtpu: 0.0.40
codegen_flags: <defaults>
</compile_context>

<pallas_src>
import jax
import jax.numpy as jnp
from jax.experimental import pallas as pl
from jax.experimental.pallas import tpu as pltpu


def att_encoder_kernel(tok_ref, table_ref, vlog_ref, out_ref):
    # tok_ref:   (TB, S, 1) int32  token ids for this batch tile
    # table_ref: (V, E)     f32    full embedding table (resident in VMEM)
    # vlog_ref:  (1, V)     f32    per-vocab attention logit: table @ w + b
    # out_ref:   (TB, E)    f32
    TB, S, _ = tok_ref.shape
    V, _ = table_ref.shape

    tok = tok_ref[...]                                               # (TB, S, 1)
    vocab_iota = jax.lax.broadcasted_iota(jnp.int32, (TB, S, V), 2)
    onehot = (tok == vocab_iota).astype(jnp.float32)                 # (TB, S, V)

    # Per-token attention logit: one-hot "gather" of the precomputed vocab logits.
    # VPU multiply + XLU lane-reduce; no MXU involvement, no (S, 1) lane-sparse matmul.
    vlog = vlog_ref[...][None]                                       # (1, 1, V)
    logits = jnp.sum(onehot * vlog, axis=-1, keepdims=True)          # (TB, S, 1)

    # exp / sum normalization.  The per-row max subtraction cancels mathematically
    # (so it still matches the raw torch.exp reference) and only adds numerical safety.
    m = jnp.max(logits, axis=1, keepdims=True)                       # (TB, 1, 1)
    vals = jnp.exp(logits - m)                                       # (TB, S, 1)
    denom = jnp.sum(vals, axis=1, keepdims=True)                     # (TB, 1, 1)
    # exact reciprocal keeps the 1e-5 check tight; approx=True (EUP slot) is also viable.
    attn = vals * pl.reciprocal(denom, approx=False)                 # (TB, S, 1)

    # Weighted sum over the sequence, expressed through the same one-hot:
    #   out[b, e] = sum_s attn[b, s] * table[tok[b, s], e]
    #             = (sum_s attn[b, s] * onehot[b, s, :]) @ table
    weighted = jnp.sum(attn * onehot, axis=1)                        # (TB, V)
    out = jnp.dot(weighted, table_ref[...],
                  preferred_element_type=jnp.float32)                # (TB, E) on the MXU
    out_ref[...] = out.astype(out_ref.dtype)


def att_code_encoder_forward(tokens, emb_table, att_w, att_b, *, max_block_b=256):
    """tokens (B,S) int32, emb_table (V,E) f32, att_w (1,E) f32, att_b (1,1) f32 -> (B,E) f32."""
    B, S = tokens.shape
    V, E = emb_table.shape

    # Attention Linear(E,1) hoisted onto the vocab table (gather . linear == linear . gather):
    # a tiny (V,) vector computed once; removes per-token E->1 matmuls and the bias operand
    # from the kernel entirely.
    vocab_logits = jnp.sum(emb_table * att_w, axis=-1)[None, :] + att_b[0, 0]   # (1, V)

    # Batch tiling: TB rows per grid step.  max_block_b is a multiple of 8 so the (TB, E)
    # output block stays sublane-aligned.  Per-step VMEM is dominated by the one-hot
    # intermediate (~TB * S * max(V,128) * 4 B), far below the 64 MiB (v7x) / 128 MiB budget.
    if B <= max_block_b:
        tb, b_pad = B, B
    else:
        tb = max_block_b
        b_pad = pl.cdiv(B, tb) * tb
    if b_pad != B:
        tokens = jnp.pad(tokens, ((0, b_pad - B), (0, 0)))   # token-0 pad rows; sliced off below
    tok3 = tokens.astype(jnp.int32).reshape(b_pad, S, 1)

    out = pl.pallas_call(
        att_encoder_kernel,
        out_shape=jax.ShapeDtypeStruct((b_pad, E), emb_table.dtype),
        grid_spec=pltpu.PrefetchScalarGridSpec(
            num_scalar_prefetch=0,
            grid=(b_pad // tb,),
            in_specs=[
                pl.BlockSpec((tb, S, 1), lambda b: (b, 0, 0)),   # token ids for this tile
                pl.BlockSpec((V, E), lambda b: (0, 0)),          # table: VMEM-resident, reused
                pl.BlockSpec((1, V), lambda b: (0, 0)),          # vocab logits: resident
            ],
            out_specs=pl.BlockSpec((tb, E), lambda b: (b, 0)),
        ),
        compiler_params=pltpu.CompilerParams(
            dimension_semantics=("parallel",)),   # v7x: batch tiles shard across the 2 TCs
    )(tok3, emb_table, vocab_logits)
    return out[:B] if b_pad != B else out


class AttCodeEncoderPallas:
    """Deterministic re-implementation of AttCodeEncoder (inference mode)."""

    def __init__(self, vocab_size, emb_size, tokens_len, hidden_size, key):
        k_emb, k_att, k_bias = jax.random.split(key, 3)
        emb_w = jax.random.uniform(k_emb, (vocab_size, emb_size),
                                   minval=-0.1, maxval=0.1, dtype=jnp.float32)
        # embedding row 0 zeroed, matching nn.init.constant_(self.embedding.weight[0], 0)
        emb_w = emb_w.at[0].set(0.0)
        self.embedding = emb_w
        # nn.Linear(emb_size, 1).weight is (1, emb_size); keep it lane-major (1, E)
        self.att_w = jax.random.uniform(k_att, (1, emb_size),
                                        minval=-0.1, maxval=0.1, dtype=jnp.float32)
        # bias: deterministic uniform in Linear's default fan-in bound
        bound = 1.0 / (emb_size ** 0.5)
        self.att_b = jax.random.uniform(k_bias, (1, 1), minval=-bound, maxval=bound,
                                        dtype=jnp.float32)

    def __call__(self, tokens):
        # tokens: (B, S) int32
        # TODO(synk): F.dropout(p=0.25) omitted — inference-mode (identity) semantics.
        return att_code_encoder_forward(tokens, self.embedding, self.att_w, self.att_b)


def _reference(tokens, emb_table, att_w, att_b):
    embedded = jnp.take(emb_table, tokens, axis=0)                          # (B, S, E)
    scores = jnp.exp(jnp.einsum("bse,e->bs", embedded, att_w[0]) + att_b[0, 0])
    attn = scores / jnp.sum(scores, axis=1, keepdims=True)
    return jnp.einsum("bse,bs->be", embedded, attn)


if __name__ == "__main__":
    vocab_size, emb_size, tokens_len, hidden_size = 50, 32, 8, 32
    batch = 2

    key = jax.random.PRNGKey(0)
    k_model, k_tok = jax.random.split(key)
    model = AttCodeEncoderPallas(vocab_size, emb_size, tokens_len, hidden_size, k_model)

    tokens = jax.random.randint(k_tok, (batch, tokens_len), 0, vocab_size, dtype=jnp.int32)

    out = jax.block_until_ready(model(tokens))

    # correctness check against a pure-JAX reference
    ref = _reference(tokens, model.embedding, model.att_w, model.att_b)
    assert out.shape == (batch, emb_size)
    assert jnp.allclose(out, ref, atol=1e-5, rtol=1e-5)

    print("KERNEL_OK")
</pallas_src>

<mosaic_0001>
module attributes {stable_mosaic.version = 11 : i64} {
  func.func @att_encoder_kernel(%arg0: i32, %arg1: memref<2x8x1xi32, #tpu.memory_space<vmem>>, %arg2: memref<50x32xf32, #tpu.memory_space<vmem>>, %arg3: memref<1x50xf32, #tpu.memory_space<vmem>>, %arg4: memref<2x32xf32, #tpu.memory_space<vmem>>) attributes {dimension_semantics = [#tpu.dimension_semantics<parallel>], iteration_bounds = array<i64: 1>, scalar_prefetch = 0 : i64, scratch_operands = 0 : i64, tpu.core_type = #tpu.core_type<tc>, window_params = [{transform_indices = @transform_0, window_bounds = array<i64: 2, 8, 1>}, {pipeline_mode = #tpu.pipeline_mode<synchronous>, transform_indices = @transform_1, window_bounds = array<i64: 50, 32>}, {pipeline_mode = #tpu.pipeline_mode<synchronous>, transform_indices = @transform_2, window_bounds = array<i64: 1, 50>}, {transform_indices = @transform_3, window_bounds = array<i64: 2, 32>}]} {
    %c0 = arith.constant 0 : index
    %c0_0 = arith.constant 0 : index
    %c0_1 = arith.constant 0 : index
    %0 = vector.load %arg1[%c0, %c0_0, %c0_1] : memref<2x8x1xi32, #tpu.memory_space<vmem>>, vector<2x8x1xi32>
    %1 = tpu.iota {dimensions = array<i32: 2>} : vector<2x8x50xi32>
    %2 = vector.broadcast %0 : vector<2x8x1xi32> to vector<2x8x50xi32>
    %3 = arith.cmpi eq, %2, %1 : vector<2x8x50xi32>
    %4 = arith.extui %3 : vector<2x8x50xi1> to vector<2x8x50xi32>
    %5 = arith.sitofp %4 : vector<2x8x50xi32> to vector<2x8x50xf32>
    %c0_2 = arith.constant 0 : index
    %c0_3 = arith.constant 0 : index
    %6 = vector.load %arg3[%c0_2, %c0_3] : memref<1x50xf32, #tpu.memory_space<vmem>>, vector<1x50xf32>
    %7 = vector.shape_cast %6 : vector<1x50xf32> to vector<1x1x50xf32>
    %8 = vector.broadcast %7 : vector<1x1x50xf32> to vector<2x8x50xf32>
    %9 = arith.mulf %5, %8 : vector<2x8x50xf32>
    %cst = arith.constant dense<0.000000e+00> : vector<2x8xf32>
    %10 = vector.multi_reduction <add>, %9, %cst [2] : vector<2x8x50xf32> to vector<2x8xf32>
    %11 = vector.shape_cast %10 : vector<2x8xf32> to vector<2x8x1xf32>
    %cst_4 = arith.constant dense<0xFF800000> : vector<2x1xf32>
    %12 = vector.multi_reduction <maximumf>, %11, %cst_4 [1] : vector<2x8x1xf32> to vector<2x1xf32>
    %13 = vector.shape_cast %12 : vector<2x1xf32> to vector<2x1x1xf32>
    %14 = vector.broadcast %13 : vector<2x1x1xf32> to vector<2x8x1xf32>
    %15 = arith.subf %11, %14 : vector<2x8x1xf32>
    %16 = math.exp %15 : vector<2x8x1xf32>
    %cst_5 = arith.constant dense<0.000000e+00> : vector<2x1xf32>
    %17 = vector.multi_reduction <add>, %16, %cst_5 [1] : vector<2x8x1xf32> to vector<2x1xf32>
    %18 = vector.shape_cast %17 : vector<2x1xf32> to vector<2x1x1xf32>
    %19 = tpu.reciprocal %18 : vector<2x1x1xf32> -> vector<2x1x1xf32>
    %20 = vector.broadcast %19 : vector<2x1x1xf32> to vector<2x8x1xf32>
    %21 = arith.mulf %16, %20 : vector<2x8x1xf32>
    %22 = vector.broadcast %21 : vector<2x8x1xf32> to vector<2x8x50xf32>
    %23 = arith.mulf %22, %5 : vector<2x8x50xf32>
    %cst_6 = arith.constant dense<0.000000e+00> : vector<2x50xf32>
    %24 = vector.multi_reduction <add>, %23, %cst_6 [1] : vector<2x8x50xf32> to vector<2x50xf32>
    %c0_7 = arith.constant 0 : index
    %c0_8 = arith.constant 0 : index
    %25 = vector.load %arg2[%c0_7, %c0_8] : memref<50x32xf32, #tpu.memory_space<vmem>>, vector<50x32xf32>
    %cst_9 = arith.constant dense<0.000000e+00> : vector<2x32xf32>
    %26 = tpu.matmul %24, %25, %cst_9 {dimension_numbers = #tpu.dot_dimension_numbers<[1], [0], [0], [1], [0, 0, 1, 1], [], []>} : vector<2x50xf32>, vector<50x32xf32>, vector<2x32xf32> -> vector<2x32xf32>
    %c0_10 = arith.constant 0 : index
    %c0_11 = arith.constant 0 : index
    %27 = vector.load %arg4[%c0_10, %c0_11] : memref<2x32xf32, #tpu.memory_space<vmem>>, vector<2x32xf32>
    tpu.vector_store %arg4[%c0_10, %c0_11], %26 {strides = array<i32>} : memref<2x32xf32, #tpu.memory_space<vmem>>, vector<2x32xf32>,
    return
  }
  func.func @transform_0(%arg0: i32) -> (i32, i32, i32) {
    %c0_i32 = arith.constant 0 : i32
    %c0_i32_0 = arith.constant 0 : i32
    %c0_i32_1 = arith.constant 0 : i32
    return %arg0, %c0_i32, %c0_i32_0 : i32, i32, i32
  }
  func.func @transform_1(%arg0: i32) -> (i32, i32) {
    %c0_i32 = arith.constant 0 : i32
    %c0_i32_0 = arith.constant 0 : i32
    %c0_i32_1 = arith.constant 0 : i32
    return %c0_i32, %c0_i32_0 : i32, i32
  }
  func.func @transform_2(%arg0: i32) -> (i32, i32) {
    %c0_i32 = arith.constant 0 : i32
    %c0_i32_0 = arith.constant 0 : i32
    %c0_i32_1 = arith.constant 0 : i32
    return %c0_i32, %c0_i32_0 : i32, i32
  }
  func.func @transform_3(%arg0: i32) -> (i32, i32) {
    %c0_i32 = arith.constant 0 : i32
    %c0_i32_0 = arith.constant 0 : i32
    return %arg0, %c0_i32 : i32, i32
  }
}

</mosaic_0001>

<bundles_post_ra>
// kernel: tpu_custom_call.1
= control target key start
LH: loop header
LB: loop body
LE: loop exit
PB: predicated region body
PF: predicated region fallthrough
CT: control target
= control target key end

     0   :  { %v265_v1 = vmov 0   ;;  %v266_v2 = vmov 0.0   ;;  %s335_s0 = inlined_call_operand.vmem [shape: s32[2,8,1], index: 0, kind: input, shape index: {}]   ;;  %s336_s1 = inlined_call_operand.vmem [shape: f32[50,32], index: 1, kind: input, shape index: {}]   ;;  %s337_s2 = inlined_call_operand.vmem [shape: f32[1,50], index: 2, kind: input, shape index: {}]   ;;  %s338_s3 = inlined_call_operand.hbm [shape: f32[2,32], index: 3, kind: output, shape index: {}]  }
   0x1   :  { %v15_v0 = vld [vmem:[%s335_s0] sm:$0xff]  ;;  %234 = vset.pattern.permute.xlu0 %v265_v1  ;;  %213 = vmatprep.subr.mxu0 %v266_v2 }
   0x2   :  { %8 = vsyncpa [#allocation3], 0  ;;  %20 = vperm.xlu0 %234, %v15_v0   ;;  %v16_v3 = vld [vmem:[%s335_s0 + $0x8] sm:$0xff]  ;;  %v17_v4 = vlaneseq  ;;  %v202_v7 = vld [vmem:[%s337_s2] ss:$0 sm:$0xff]  ;;  %vm40_vm1 = vcmask 408576  }
   0x3   :  { %v103_v15 = vld [vmem:[%s336_s1 + $0x30] sm:$0x3]  ;;  %vm110_vm3 = vcmask 1041408   ;;  %v102_v16 = vld [vmem:[%s336_s1 + $0x28] sm:$0xff]  ;;  %vm267_vm4 = vmmov 0   ;;  %v101_v17 = vld [vmem:[%s336_s1 + $0x20] sm:$0xff] }
   0x4   :  { %v18_v5 = vand.u32 127, %v17_v4  ;;  %214 = vmatpush3.msk.msra.mxu0 %vm110_vm3, %v103_v15  ;;  %227 = vmatprep.mubr.msk.f32.mxu0 %vm267_vm4, %v266_v2  ;;  %v100_v18 = vld [vmem:[%s336_s1 + $0x18] sm:$0xff]  ;;  %v99_v19 = vld [vmem:[%s336_s1 + $0x10] sm:$0xff]  ;;  %v98_v20 = vld [vmem:[%s336_s1 + $0x8] sm:$0xff]  ;;  %vm106_vm5 = vcmask 1041409   ;;  %vm184_vm6 = vcmask 254976  }
   0x5   :  { %215 = vmatprep.subr.mxu0 %v266_v2  ;;  %v97_v21 = vld [vmem:[%s336_s1] sm:$0xff]  ;;  %s268_s1 = smov [#allocation2]  }
   0x6   :  { %23 = vperm.xlu0 %234, %v16_v3   ;;  %216 = vmatpush3.msra.mxu0 %v102_v16  ;;  %s192_s30 = sshll.u32 %s268_s1, 4  ;;  %s193_s30 = int_to_ptr.vmem [resolvable:$true] %s192_s30 }
   0x7   :  { %217 = vmatprep.subr.mxu0 %v266_v2  ;;  %s243_s4 = scalar_lea.vmem %s193_s30, 32  ;;  %p248_p1 = scmp.lt.s32.totalorder %s193_s30, %s193_s30 }
   0x8   :  { %218 = vmatpush3.msra.mxu0 %v101_v17  ;;  %p244_p0 = scmp.ne.s32.totalorder %s193_s30, %s243_s4  ;;  %p249_p2 = scmp.lt.s32.totalorder %s243_s4, %s243_s4 }
   0x9   :  { %219 = vmatprep.subr.mxu0 %v266_v2 }
   0xa   :  { %220 = vmatpush3.msra.mxu0 %v100_v18  ;;  %p250_p3 = por %p249_p2, %p248_p1 }
   0xb   :  { %221 = vmatprep.subr.mxu0 %v266_v2 }
   0xc   :  { %222 = vmatpush3.msra.mxu0 %v99_v19  ;;  %p251_p4 = pnand %p250_p3, %p244_p0 }
   0xd   :  { %223 = vmatprep.subr.mxu0 %v266_v2 }
   0xe   :  { %224 = vmatpush3.msra.mxu0 %v98_v20 }
   0xf   :  { %225 = vmatprep.subr.mxu0 %v266_v2 }
  0x10   :  { %226 = vmatpush3.msra.mxu0 %v97_v21 }
  0x7d   :  { %v21_v6 = vpop.permute.xlu0 %20 }
  0x7e   :  { %vm25_vm0 = vcmp.eq.s32.totalorder %v21_v6, %v18_v5 }
  0x7f   :  { %v298_v8 = vsel %vm25_vm0, 1.0, %v266_v2 }
  0x80   :  { %v38_v9 = vmul.f32 %v202_v7, %v298_v8 }
  0x81   :  { %v24_v10 = vpop.permute.xlu0 %23 }
  0x82   :  { %vm26_vm2 = vcmp.eq.s32.totalorder %v24_v10, %v18_v5  ;;  %v41_v11 = vsel %vm40_vm1, %v38_v9, 0.0 }
  0x83   :  { %v302_v12 = vsel %vm26_vm2, 1.0, %v266_v2  ;;  %42 = vadd.xlane.f32.xlu1 %v41_v11 }
  0x84   :  { %v39_v13 = vmul.f32 %v202_v7, %v302_v12 }
  0x86   :  { %v44_v14 = vsel %vm40_vm1, %v39_v13, 0.0 }
  0x87   :  { %45 = vadd.xlane.f32.xlu1 %v44_v14 }
 0x10c   :  { %v43_v22 = vpop.xlane.xlu1 %42 }
 0x10d   :  { %v47_v23 = vrot.slane %v43_v22, 4 }
 0x10f   :  { %v48_v24 = vmax.f32 %v43_v22, %v47_v23 }
 0x110   :  { %v46_v25 = vpop.xlane.xlu1 %45 }
 0x111   :  { %v49_v26 = vrot.slane %v48_v24, 2  ;;  %v53_v27 = vrot.slane %v46_v25, 4 }
 0x113   :  { %v50_v28 = vmax.f32 %v48_v24, %v49_v26  ;;  %v54_v29 = vmax.f32 %v46_v25, %v53_v27 }
 0x115   :  { %v51_v30 = vrot.slane %v50_v28, 1  ;;  %v55_v31 = vrot.slane %v54_v29, 2 }
 0x117   :  { %v52_v32 = vmax.f32 %v50_v28, %v51_v30  ;;  %v56_v33 = vmax.f32 %v54_v29, %v55_v31 }
 0x119   :  { %v59_v34 = vsub.f32 %v43_v22, %v52_v32  ;;  %v57_v35 = vrot.slane %v56_v33, 1 }
 0x11b   :  { %v61_v36 = vmul.f32 1.442695, %v59_v34  ;;  %v58_v37 = vmax.f32 %v56_v33, %v57_v35 }
 0x11d   :  { %235 = vpow2.f32 %v61_v36  ;;  %v60_v38 = vsub.f32 %v46_v25, %v58_v37 }
 0x11f   :  { %v63_v39 = vmul.f32 1.442695, %v60_v38 }
 0x121   :  { %237 = vpow2.f32 %v63_v39 }
 0x12a   :  { %v236_v40 = vpop.eup %235 }
 0x12b   :  { %v65_v41 = vrot.slane %v236_v40, 4 }
 0x12d   :  { %v66_v42 = vadd.f32 %v236_v40, %v65_v41 }
 0x12e   :  { %v238_v43 = vpop.eup %237 }
 0x12f   :  { %v71_v44 = vrot.slane %v238_v43, 4  ;;  %v67_v45 = vrot.slane %v66_v42, 2 }
 0x131   :  { %v72_v46 = vadd.f32 %v238_v43, %v71_v44  ;;  %v68_v47 = vadd.f32 %v67_v45, %v66_v42 }
 0x133   :  { %v69_v48 = vrot.slane %v68_v47, 1  ;;  %v73_v49 = vrot.slane %v72_v46, 2 }
 0x135   :  { %v70_v50 = vadd.f32 %v69_v48, %v68_v47  ;;  %v74_v51 = vadd.f32 %v73_v49, %v72_v46 }
 0x137   :  { %v75_v52 = vrot.slane %v74_v51, 1  ;;  %239 = vrcp.f32 %v70_v50 }
 0x139   :  { %v76_v53 = vadd.f32 %v75_v52, %v74_v51 }
 0x13b   :  { %241 = vrcp.f32 %v76_v53 }
 0x144   :  { %v240_v54 = vpop.eup %239 }
 0x145   :  { %v79_v55 = vmul.f32 %v240_v54, %v236_v40 }
 0x147   :  { %v81_v56 = vmul.f32 %v298_v8, %v79_v55 }
 0x148   :  { %v242_v57 = vpop.eup %241 }
 0x149   :  { %v80_v58 = vmul.f32 %v242_v57, %v238_v43  ;;  %v83_v59 = vsel %vm40_vm1, %v81_v56, 0.0 }
 0x14a   :  { %v84_v60 = vrot.slane %v83_v59, 4 }
 0x14b   :  { %v82_v61 = vmul.f32 %v302_v12, %v80_v58 }
 0x14c   :  { %v85_v62 = vadd.f32 %v84_v60, %v83_v59 }
 0x14d   :  { %v90_v63 = vsel %vm40_vm1, %v82_v61, 0.0 }
 0x14e   :  { %v86_v0 = vrot.slane %v85_v62, 2  ;;  %v91_v1 = vrot.slane %v90_v63, 4 }
 0x150   :  { %v87_v2 = vadd.f32 %v86_v0, %v85_v62  ;;  %v92_v3 = vadd.f32 %v91_v1, %v90_v63 }
 0x152   :  { %v93_v4 = vrot.slane %v92_v3, 2  ;;  %v88_v5 = vrot.slane %v87_v2, 1 }
 0x154   :  { %v94_v6 = vadd.f32 %v93_v4, %v92_v3  ;;  %v89_v8 = vadd.f32 %v88_v5, %v87_v2 }
 0x156   :  { %v95_v7 = vrot.slane %v94_v6, 1 }
 0x158   :  { %v96_v9 = vadd.f32 %v95_v7, %v94_v6 }
 0x15a   :  { %v107_v10 = vsel %vm106_vm5, %v96_v9, %v89_v8 }
 0x15b   :  { %228 = vmatmul.mubr.msk.f32.vlgmr.msra.gmra.mxu0 %vm40_vm1, %v107_v10 }
 0x21b   :  { %v180_v11 = vpop.f32.mrf.mxu0 }
 0x21c   :  { %185 = vst.msk [vmem:[#allocation2] sm:$0x3] %vm184_vm6, %v180_v11 }
 0x21d   :  { %v229_v12 = vpop.f32.mrf.mxu0 }
 0x21e   :  { %254 = shalt.err (!%p251_p4)
}
 0x21f   :  { %195 = dma.vmem_to_hbm [thread:$0]  %s193_s30, 32, %s338_s3, [#allocation3]  }
 0x220   :  { %263 = dma.done.wait [#allocation3], 32  }
 0x221   :  { %264 = vsyncadd [#allocation3], 4294967264 }
 0x222   :  { %199 = vsyncpa [#allocation3], 1 }

</bundles_post_ra>
